<compile_context>
chip_gen: v7x
topology: tpu7x:2x2x1
jax: 0.10.0
libtpu: 0.0.40
codegen_flags: <defaults>
</compile_context>

<pallas_src>
import functools
import math

import jax
import jax.numpy as jnp
from jax.experimental import pallas as pl
from jax.experimental.pallas import tpu as pltpu


def _round_up(x, m):
    return ((x + m - 1) // m) * m


# ---------------------------------------------------------------------------
# Pallas kernel: fused  (patches @ W) * scale + bias
# ---------------------------------------------------------------------------
def _equalized_gemm_kernel(p_ref, w_ref, b_ref, o_ref, *, scale):
    # p_ref: (TM, Kdim)    im2col patch rows for this tile
    # w_ref: (Kdim, Cout)  pre-reordered weight (no transpose needed in-kernel)
    # b_ref: (1, Cout)     bias row (unscaled, like F.conv2d)
    acc = jnp.dot(p_ref[...], w_ref[...], preferred_element_type=jnp.float32)
    o_ref[...] = acc * scale + b_ref[...]


# ---------------------------------------------------------------------------
# Forward wrapper (matches torch EqualizedConv2d.forward)
# ---------------------------------------------------------------------------
def equalized_conv2d_forward(x, weight, bias=None, *, stride=1, padding=0,
                             tile_m=512):
    B, C_in, H, W = x.shape
    C_out, C_in_w, K, K2 = weight.shape
    assert C_in_w == C_in and K == K2, (weight.shape, x.shape)

    scale = 1.0 / math.sqrt(C_in * K * K)
    H_out = (H + 2 * padding - K) // stride + 1
    W_out = (W + 2 * padding - K) // stride + 1

    # --- layout plumbing (wrapper side): NCHW -> NHWC, zero-pad, im2col ---
    x_nhwc = jnp.transpose(x, (0, 2, 3, 1)).astype(jnp.float32)
    x_pad = jnp.pad(x_nhwc, ((0, 0), (padding, padding), (padding, padding), (0, 0)))

    h_span = (H_out - 1) * stride + 1
    w_span = (W_out - 1) * stride + 1
    windows = []
    for kh in range(K):
        for kw in range(K):
            windows.append(
                x_pad[:, kh:kh + h_span:stride, kw:kw + w_span:stride, :])
    # (B, H_out, W_out, K*K, C_in) -> (M, K*K*C_in); feature order = (kh, kw, ci)
    patches = jnp.stack(windows, axis=3).reshape(B * H_out * W_out, K * K * C_in)

    # weight (C_out, C_in, K, K) -> (K, K, C_in, C_out) -> (K*K*C_in, C_out)
    # so the kernel does a plain jnp.dot with no `.T`.
    w_mat = jnp.transpose(weight, (2, 3, 1, 0)).reshape(K * K * C_in, C_out)
    w_mat = w_mat.astype(jnp.float32)

    if bias is None:
        bias = jnp.zeros((C_out,), jnp.float32)
    b_row = bias.reshape(1, C_out).astype(jnp.float32)

    M = B * H_out * W_out
    Kdim = K * K * C_in

    # M tile: biggest tile up to tile_m, 8-aligned; pad M so the grid divides evenly.
    TM = min(tile_m, _round_up(M, 8))
    M_pad = _round_up(M, TM)
    if M_pad != M:
        patches = jnp.pad(patches, ((0, M_pad - M), (0, 0)))

    out_flat = pl.pallas_call(
        functools.partial(_equalized_gemm_kernel, scale=scale),
        out_shape=jax.ShapeDtypeStruct((M_pad, C_out), jnp.float32),
        grid=(M_pad // TM,),
        in_specs=[
            pl.BlockSpec((TM, Kdim), lambda i: (i, 0)),      # patch rows (tiled)
            pl.BlockSpec((Kdim, C_out), lambda i: (0, 0)),   # weight (resident)
            pl.BlockSpec((1, C_out), lambda i: (0, 0)),      # bias (resident)
        ],
        out_specs=pl.BlockSpec((TM, C_out), lambda i: (i, 0)),
        compiler_params=pltpu.CompilerParams(
            dimension_semantics=("parallel",)),
    )(patches, w_mat, b_row)

    out = out_flat[:M].reshape(B, H_out, W_out, C_out)
    return jnp.transpose(out, (0, 3, 1, 2))  # back to NCHW like torch


# ---------------------------------------------------------------------------
# Pure-JAX reference (mirrors the PyTorch module) for a correctness check
# ---------------------------------------------------------------------------
def equalized_conv2d_reference(x, weight, bias=None, *, stride=1, padding=0):
    C_in, K = weight.shape[1], weight.shape[2]
    scale = 1.0 / math.sqrt(C_in * K * K)
    out = jax.lax.conv_general_dilated(
        x, weight * scale,
        window_strides=(stride, stride),
        padding=[(padding, padding), (padding, padding)],
        dimension_numbers=("NCHW", "OIHW", "NCHW"),
        precision=jax.lax.Precision.HIGHEST)
    if bias is not None:
        out = out + bias.reshape(1, -1, 1, 1)
    return out


if __name__ == "__main__":
    # Small shapes consistent with the module.
    B, C_IN, C_OUT, K, H, W = 2, 4, 8, 3, 16, 16
    STRIDE, PADDING = 1, 1

    key = jax.random.PRNGKey(0)
    k_x, k_w = jax.random.split(key)
    x = jax.random.normal(k_x, (B, C_IN, H, W), jnp.float32)
    weight = jax.random.normal(k_w, (C_OUT, C_IN, K, K), jnp.float32)  # torch.randn
    bias = jnp.zeros((C_OUT,), jnp.float32)                            # torch.zeros

    out = equalized_conv2d_forward(x, weight, bias, stride=STRIDE, padding=PADDING)
    out = jax.block_until_ready(out)

    ref = equalized_conv2d_reference(x, weight, bias, stride=STRIDE, padding=PADDING)

    assert out.shape == ref.shape, (out.shape, ref.shape)
    assert jnp.allclose(out, ref, atol=2e-2, rtol=2e-2), \
        f"max abs err = {jnp.max(jnp.abs(out - ref))}"

    print("KERNEL_OK")
</pallas_src>

<mosaic_0001>
module attributes {stable_mosaic.version = 11 : i64} {
  func.func @_equalized_gemm_kernel(%arg0: i32, %arg1: memref<512x36xf32, #tpu.memory_space<vmem>>, %arg2: memref<36x8xf32, #tpu.memory_space<vmem>>, %arg3: memref<1x8xf32, #tpu.memory_space<vmem>>, %arg4: memref<512x8xf32, #tpu.memory_space<vmem>>) attributes {dimension_semantics = [#tpu.dimension_semantics<parallel>], iteration_bounds = array<i64: 1>, scalar_prefetch = 0 : i64, scratch_operands = 0 : i64, tpu.core_type = #tpu.core_type<tc>, window_params = [{transform_indices = @transform_0, window_bounds = array<i64: 512, 36>}, {pipeline_mode = #tpu.pipeline_mode<synchronous>, transform_indices = @transform_1, window_bounds = array<i64: 36, 8>}, {pipeline_mode = #tpu.pipeline_mode<synchronous>, transform_indices = @transform_2, window_bounds = array<i64: 1, 8>}, {transform_indices = @transform_3, window_bounds = array<i64: 512, 8>}]} {
    %c0 = arith.constant 0 : index
    %c0_0 = arith.constant 0 : index
    %0 = vector.load %arg1[%c0, %c0_0] : memref<512x36xf32, #tpu.memory_space<vmem>>, vector<512x36xf32>
    %c0_1 = arith.constant 0 : index
    %c0_2 = arith.constant 0 : index
    %1 = vector.load %arg2[%c0_1, %c0_2] : memref<36x8xf32, #tpu.memory_space<vmem>>, vector<36x8xf32>
    %cst = arith.constant dense<0.000000e+00> : vector<512x8xf32>
    %2 = tpu.matmul %0, %1, %cst {dimension_numbers = #tpu.dot_dimension_numbers<[1], [0], [0], [1], [0, 0, 1, 1], [], []>} : vector<512x36xf32>, vector<36x8xf32>, vector<512x8xf32> -> vector<512x8xf32>
    %cst_3 = arith.constant 0.166666672 : f32
    %3 = vector.broadcast %cst_3 : f32 to vector<512x8xf32>
    %4 = arith.mulf %2, %3 : vector<512x8xf32>
    %c0_4 = arith.constant 0 : index
    %c0_5 = arith.constant 0 : index
    %5 = vector.load %arg3[%c0_4, %c0_5] : memref<1x8xf32, #tpu.memory_space<vmem>>, vector<1x8xf32>
    %6 = vector.broadcast %5 : vector<1x8xf32> to vector<512x8xf32>
    %7 = arith.addf %4, %6 : vector<512x8xf32>
    %c0_6 = arith.constant 0 : index
    %c0_7 = arith.constant 0 : index
    %8 = vector.load %arg4[%c0_6, %c0_7] : memref<512x8xf32, #tpu.memory_space<vmem>>, vector<512x8xf32>
    tpu.vector_store %arg4[%c0_6, %c0_7], %7 {strides = array<i32>} : memref<512x8xf32, #tpu.memory_space<vmem>>, vector<512x8xf32>,
    return
  }
  func.func @transform_0(%arg0: i32) -> (i32, i32) {
    %c0_i32 = arith.constant 0 : i32
    %c0_i32_0 = arith.constant 0 : i32
    return %arg0, %c0_i32 : i32, i32
  }
  func.func @transform_1(%arg0: i32) -> (i32, i32) {
    %c0_i32 = arith.constant 0 : i32
    %c0_i32_0 = arith.constant 0 : i32
    %c0_i32_1 = arith.constant 0 : i32
    return %c0_i32, %c0_i32_0 : i32, i32
  }
  func.func @transform_2(%arg0: i32) -> (i32, i32) {
    %c0_i32 = arith.constant 0 : i32
    %c0_i32_0 = arith.constant 0 : i32
    %c0_i32_1 = arith.constant 0 : i32
    return %c0_i32, %c0_i32_0 : i32, i32
  }
  func.func @transform_3(%arg0: i32) -> (i32, i32) {
    %c0_i32 = arith.constant 0 : i32
    %c0_i32_0 = arith.constant 0 : i32
    return %arg0, %c0_i32 : i32, i32
  }
}

</mosaic_0001>

<bundles_post_ra>
// kernel: tpu_custom_call.1
= control target key start
LH: loop header
LB: loop body
LE: loop exit
PB: predicated region body
PF: predicated region fallthrough
CT: control target
= control target key end

     0   :  { %vm83_vm0 = vcmask 293888   ;;  %vm276_vm1 = vcmask 1043456   ;;  %vm800_vm2 = vcmask 64512   ;;  %s1740_s1 = inlined_call_operand.vmem [shape: f32[36,8], index: 1, kind: input, shape index: {}]   ;;  %s1741_s0 = inlined_call_operand.vmem [shape: f32[512,36], index: 0, kind: input, shape index: {}]   ;;  %s1742_s2 = inlined_call_operand.vmem [shape: f32[1,8], index: 2, kind: input, shape index: {}]   ;;  %s1743_s3 = inlined_call_operand.vmem [shape: f32[512,8], index: 3, kind: output, shape index: {}]  }
   0x1   :  { %v78_v0 = vld [vmem:[%s1740_s1] sm:$0xff]  ;;  %v79_v1 = vld [vmem:[%s1740_s1 + $0x8] sm:$0xff]  ;;  %v80_v2 = vld [vmem:[%s1740_s1 + $0x10] sm:$0xff] }
   0x2   :  { %v1110_v3 = vpack.c.bf16 %v79_v1, %v78_v0  ;;  %v81_v4 = vld [vmem:[%s1740_s1 + $0x18] sm:$0xff]  ;;  %v14_v5 = vld [vmem:[%s1741_s0] sm:$0xff]  ;;  %v15_v9 = vld [vmem:[%s1741_s0 + $0x8] sm:$0xff] }
   0x3   :  { %v1114_v6 = vpack.c.bf16 %v81_v4, %v80_v2  ;;  %1014 = vmatprep.mubr.msk.f32.mxu0 %vm83_vm0, %v14_v5  ;;  %v46_v7 = vld [vmem:[%s1741_s0 + $0x100] sm:$0xff]  ;;  %v47_v10 = vld [vmem:[%s1741_s0 + $0x108] sm:$0xff]  ;;  %v16_v11 = vld [vmem:[%s1741_s0 + $0x10] sm:$0xff] }
   0x4   :  { %1111 = vmatprep.subr.bf16.mxu0 %v1110_v3  ;;  %1118 = vmatprep.subr.bf16.mxu1 %v1110_v3  ;;  %v82_v8 = vld [vmem:[%s1740_s1 + $0x20] sm:$0xf]  ;;  %v48_v12 = vld [vmem:[%s1741_s0 + $0x110] sm:$0xff]  ;;  %v17_v13 = vld [vmem:[%s1741_s0 + $0x18] sm:$0xff] }
   0x5   :  { %1113 = vmatpush3.bf16.msra.mxu0 %v1110_v3  ;;  %1121 = vmatpush3.bf16.msra.mxu1 %v1110_v3  ;;  %v49_v14 = vld [vmem:[%s1741_s0 + $0x118] sm:$0xff]  ;;  %v18_v15 = vld [vmem:[%s1741_s0 + $0x20] sm:$0xff]  ;;  %v19_v17 = vld [vmem:[%s1741_s0 + $0x28] sm:$0xff] }
   0x6   :  { %1115 = vmatprep.subr.bf16.mxu0 %v1114_v6  ;;  %1119 = vmatprep.subr.bf16.mxu1 %v1114_v6  ;;  %v50_v16 = vld [vmem:[%s1741_s0 + $0x120] sm:$0xff]  ;;  %v51_v18 = vld [vmem:[%s1741_s0 + $0x128] sm:$0xff]  ;;  %v20_v19 = vld [vmem:[%s1741_s0 + $0x30] sm:$0xff] }
   0x7   :  { %1062 = vmatprep.mubr.msk.f32.mxu1 %vm83_vm0, %v46_v7  ;;  %v52_v20 = vld [vmem:[%s1741_s0 + $0x130] sm:$0xff]  ;;  %v21_v21 = vld [vmem:[%s1741_s0 + $0x38] sm:$0xff]  ;;  %v22_v23 = vld [vmem:[%s1741_s0 + $0x40] sm:$0xff] }
   0x8   :  { %v53_v22 = vld [vmem:[%s1741_s0 + $0x138] sm:$0xff]  ;;  %v54_v24 = vld [vmem:[%s1741_s0 + $0x140] sm:$0xff]  ;;  %v23_v25 = vld [vmem:[%s1741_s0 + $0x48] sm:$0xff] }
   0x9   :  { %1117 = vmatpush3.bf16.msra.mxu0 %v1114_v6  ;;  %1122 = vmatpush3.bf16.msra.mxu1 %v1114_v6  ;;  %v55_v26 = vld [vmem:[%s1741_s0 + $0x148] sm:$0xff]  ;;  %v24_v27 = vld [vmem:[%s1741_s0 + $0x50] sm:$0xff]  ;;  %v25_v29 = vld [vmem:[%s1741_s0 + $0x58] sm:$0xff] }
   0xa   :  { %1012 = vmatprep.subr.msk.mxu0 %vm276_vm1, %v82_v8  ;;  %1120 = vmatprep.subr.msk.mxu1 %vm276_vm1, %v82_v8  ;;  %v56_v28 = vld [vmem:[%s1741_s0 + $0x150] sm:$0xff]  ;;  %v57_v30 = vld [vmem:[%s1741_s0 + $0x158] sm:$0xff]  ;;  %v26_v31 = vld [vmem:[%s1741_s0 + $0x60] sm:$0xff] }
   0xb   :  { %v58_v32 = vld [vmem:[%s1741_s0 + $0x160] sm:$0xff]  ;;  %v27_v33 = vld [vmem:[%s1741_s0 + $0x68] sm:$0xff]  ;;  %v28_v35 = vld [vmem:[%s1741_s0 + $0x70] sm:$0xff] }
   0xc   :  { %v59_v34 = vld [vmem:[%s1741_s0 + $0x168] sm:$0xff]  ;;  %v60_v36 = vld [vmem:[%s1741_s0 + $0x170] sm:$0xff]  ;;  %v29_v37 = vld [vmem:[%s1741_s0 + $0x78] sm:$0xff] }
   0xd   :  { %1013 = vmatpush3.msk.msra.mxu0 %vm276_vm1, %v82_v8  ;;  %1123 = vmatpush3.msk.msra.mxu1 %vm276_vm1, %v82_v8  ;;  %v61_v38 = vld [vmem:[%s1741_s0 + $0x178] sm:$0xff]  ;;  %v30_v39 = vld [vmem:[%s1741_s0 + $0x80] sm:$0xff]  ;;  %v31_v41 = vld [vmem:[%s1741_s0 + $0x88] sm:$0xff] }
   0xe   :  { %1015 = vmatmul.mubr.msk.f32.vlgmr.msra.gmra.mrb[0].mxu0 %vm83_vm0, %v15_v9  ;;  %1063 = vmatmul.mubr.msk.f32.vlgmr.msra.gmra.mrb[0].mxu1 %vm83_vm0, %v47_v10  ;;  %v62_v40 = vld [vmem:[%s1741_s0 + $0x180] sm:$0xff]  ;;  %v63_v42 = vld [vmem:[%s1741_s0 + $0x188] sm:$0xff]  ;;  %v32_v43 = vld [vmem:[%s1741_s0 + $0x90] sm:$0xff] }
   0xf   :  { %1017 = vmatprep.mubr.msk.f32.mxu0 %vm83_vm0, %v16_v11  ;;  %1065 = vmatprep.mubr.msk.f32.mxu1 %vm83_vm0, %v48_v12  ;;  %v64_v44 = vld [vmem:[%s1741_s0 + $0x190] sm:$0xff]  ;;  %v33_v45 = vld [vmem:[%s1741_s0 + $0x98] sm:$0xff]  ;;  %v34_v47 = vld [vmem:[%s1741_s0 + $0xa0] sm:$0xff] }
  0x10   :  { %v65_v46 = vld [vmem:[%s1741_s0 + $0x198] sm:$0xff]  ;;  %v66_v48 = vld [vmem:[%s1741_s0 + $0x1a0] sm:$0xff]  ;;  %v35_v49 = vld [vmem:[%s1741_s0 + $0xa8] sm:$0xff] }
  0x11   :  { %v67_v50 = vld [vmem:[%s1741_s0 + $0x1a8] sm:$0xff]  ;;  %v36_v51 = vld [vmem:[%s1741_s0 + $0xb0] sm:$0xff]  ;;  %v37_v53 = vld [vmem:[%s1741_s0 + $0xb8] sm:$0xff] }
  0x12   :  { %1018 = vmatmul.mubr.msk.f32.gmra.mrb[2].mxu0 %vm83_vm0, %v17_v13  ;;  %1066 = vmatmul.mubr.msk.f32.gmra.mrb[2].mxu1 %vm83_vm0, %v49_v14  ;;  %v68_v52 = vld [vmem:[%s1741_s0 + $0x1b0] sm:$0xff]  ;;  %v69_v54 = vld [vmem:[%s1741_s0 + $0x1b8] sm:$0xff]  ;;  %v38_v55 = vld [vmem:[%s1741_s0 + $0xc0] sm:$0xff] }
  0x13   :  { %1020 = vmatprep.mubr.msk.f32.mxu0 %vm83_vm0, %v18_v15  ;;  %1068 = vmatprep.mubr.msk.f32.mxu1 %vm83_vm0, %v50_v16  ;;  %v70_v56 = vld [vmem:[%s1741_s0 + $0x1c0] sm:$0xff]  ;;  %v39_v57 = vld [vmem:[%s1741_s0 + $0xc8] sm:$0xff]  ;;  %v40_v59 = vld [vmem:[%s1741_s0 + $0xd0] sm:$0xff] }
  0x14   :  { %v71_v58 = vld [vmem:[%s1741_s0 + $0x1c8] sm:$0xff]  ;;  %v72_v60 = vld [vmem:[%s1741_s0 + $0x1d0] sm:$0xff]  ;;  %v41_v61 = vld [vmem:[%s1741_s0 + $0xd8] sm:$0xff] }
  0x15   :  { %v73_v62 = vld [vmem:[%s1741_s0 + $0x1d8] sm:$0xff]  ;;  %v42_v63 = vld [vmem:[%s1741_s0 + $0xe0] sm:$0xff]  ;;  %v43_v1 = vld [vmem:[%s1741_s0 + $0xe8] sm:$0xff] }
  0x16   :  { %1021 = vmatmul.mubr.msk.f32.gmra.mrb[4].mxu0 %vm83_vm0, %v19_v17  ;;  %1069 = vmatmul.mubr.msk.f32.gmra.mrb[4].mxu1 %vm83_vm0, %v51_v18  ;;  %v74_v0 = vld [vmem:[%s1741_s0 + $0x1e0] sm:$0xff]  ;;  %v75_v2 = vld [vmem:[%s1741_s0 + $0x1e8] sm:$0xff]  ;;  %v44_v3 = vld [vmem:[%s1741_s0 + $0xf0] sm:$0xff] }
  0x17   :  { %1023 = vmatprep.mubr.msk.f32.mxu0 %vm83_vm0, %v20_v19  ;;  %1071 = vmatprep.mubr.msk.f32.mxu1 %vm83_vm0, %v52_v20  ;;  %v76_v4 = vld [vmem:[%s1741_s0 + $0x1f0] sm:$0xff]  ;;  %v45_v5 = vld [vmem:[%s1741_s0 + $0xf8] sm:$0xff]  ;;  %v1418_v8 = vld [vmem:[%s1742_s2] ss:$0 sm:$0xff] }
  0x18   :  { %v77_v6 = vld [vmem:[%s1741_s0 + $0x1f8] sm:$0xff] }
  0x1a   :  { %1024 = vmatmul.mubr.msk.f32.gmra.mrb[6].mxu0 %vm83_vm0, %v21_v21  ;;  %1072 = vmatmul.mubr.msk.f32.gmra.mrb[6].mxu1 %vm83_vm0, %v53_v22 }
  0x1b   :  { %1026 = vmatprep.mubr.msk.f32.mxu0 %vm83_vm0, %v22_v23  ;;  %1074 = vmatprep.mubr.msk.f32.mxu1 %vm83_vm0, %v54_v24 }
  0x1e   :  { %1027 = vmatmul.mubr.msk.f32.gmra.mrb[8].mxu0 %vm83_vm0, %v23_v25  ;;  %1075 = vmatmul.mubr.msk.f32.gmra.mrb[8].mxu1 %vm83_vm0, %v55_v26 }
  0x1f   :  { %1029 = vmatprep.mubr.msk.f32.mxu0 %vm83_vm0, %v24_v27  ;;  %1077 = vmatprep.mubr.msk.f32.mxu1 %vm83_vm0, %v56_v28 }
  0x22   :  { %1030 = vmatmul.mubr.msk.f32.gmra.mrb[10].mxu0 %vm83_vm0, %v25_v29  ;;  %1078 = vmatmul.mubr.msk.f32.gmra.mrb[10].mxu1 %vm83_vm0, %v57_v30 }
  0x23   :  { %1032 = vmatprep.mubr.msk.f32.mxu0 %vm83_vm0, %v26_v31  ;;  %1080 = vmatprep.mubr.msk.f32.mxu1 %vm83_vm0, %v58_v32 }
  0x26   :  { %1033 = vmatmul.mubr.msk.f32.gmra.mrb[12].mxu0 %vm83_vm0, %v27_v33  ;;  %1081 = vmatmul.mubr.msk.f32.gmra.mrb[12].mxu1 %vm83_vm0, %v59_v34 }
  0x27   :  { %1035 = vmatprep.mubr.msk.f32.mxu0 %vm83_vm0, %v28_v35  ;;  %1083 = vmatprep.mubr.msk.f32.mxu1 %vm83_vm0, %v60_v36 }
  0x2a   :  { %1036 = vmatmul.mubr.msk.f32.gmra.mrb[14].mxu0 %vm83_vm0, %v29_v37  ;;  %1084 = vmatmul.mubr.msk.f32.gmra.mrb[14].mxu1 %vm83_vm0, %v61_v38 }
  0x2b   :  { %1038 = vmatprep.mubr.msk.f32.mxu0 %vm83_vm0, %v30_v39  ;;  %1086 = vmatprep.mubr.msk.f32.mxu1 %vm83_vm0, %v62_v40 }
  0x2e   :  { %1039 = vmatmul.mubr.msk.f32.gmra.mrb[16].mxu0 %vm83_vm0, %v31_v41  ;;  %1087 = vmatmul.mubr.msk.f32.gmra.mrb[16].mxu1 %vm83_vm0, %v63_v42 }
  0x2f   :  { %1041 = vmatprep.mubr.msk.f32.mxu0 %vm83_vm0, %v32_v43  ;;  %1089 = vmatprep.mubr.msk.f32.mxu1 %vm83_vm0, %v64_v44 }
  0x32   :  { %1042 = vmatmul.mubr.msk.f32.gmra.mrb[18].mxu0 %vm83_vm0, %v33_v45  ;;  %1090 = vmatmul.mubr.msk.f32.gmra.mrb[18].mxu1 %vm83_vm0, %v65_v46 }
  0x33   :  { %1044 = vmatprep.mubr.msk.f32.mxu0 %vm83_vm0, %v34_v47  ;;  %1092 = vmatprep.mubr.msk.f32.mxu1 %vm83_vm0, %v66_v48 }
  0x36   :  { %1045 = vmatmul.mubr.msk.f32.gmra.mrb[20].mxu0 %vm83_vm0, %v35_v49  ;;  %1093 = vmatmul.mubr.msk.f32.gmra.mrb[20].mxu1 %vm83_vm0, %v67_v50 }
  0x37   :  { %1047 = vmatprep.mubr.msk.f32.mxu0 %vm83_vm0, %v36_v51  ;;  %1095 = vmatprep.mubr.msk.f32.mxu1 %vm83_vm0, %v68_v52 }
  0x3a   :  { %1048 = vmatmul.mubr.msk.f32.gmra.mrb[22].mxu0 %vm83_vm0, %v37_v53  ;;  %1096 = vmatmul.mubr.msk.f32.gmra.mrb[22].mxu1 %vm83_vm0, %v69_v54 }
  0x3b   :  { %1050 = vmatprep.mubr.msk.f32.mxu0 %vm83_vm0, %v38_v55  ;;  %1098 = vmatprep.mubr.msk.f32.mxu1 %vm83_vm0, %v70_v56 }
  0x3e   :  { %1051 = vmatmul.mubr.msk.f32.gmra.mrb[24].mxu0 %vm83_vm0, %v39_v57  ;;  %1099 = vmatmul.mubr.msk.f32.gmra.mrb[24].mxu1 %vm83_vm0, %v71_v58 }
  0x3f   :  { %1053 = vmatprep.mubr.msk.f32.mxu0 %vm83_vm0, %v40_v59  ;;  %1101 = vmatprep.mubr.msk.f32.mxu1 %vm83_vm0, %v72_v60 }
  0x42   :  { %1054 = vmatmul.mubr.msk.f32.gmra.mrb[26].mxu0 %vm83_vm0, %v41_v61  ;;  %1102 = vmatmul.mubr.msk.f32.gmra.mrb[26].mxu1 %vm83_vm0, %v73_v62 }
  0x43   :  { %1056 = vmatprep.mubr.msk.f32.mxu0 %vm83_vm0, %v42_v63  ;;  %1104 = vmatprep.mubr.msk.f32.mxu1 %vm83_vm0, %v74_v0 }
  0x46   :  { %1057 = vmatmul.mubr.msk.f32.gmra.mrb[28].mxu0 %vm83_vm0, %v43_v1  ;;  %1105 = vmatmul.mubr.msk.f32.gmra.mrb[28].mxu1 %vm83_vm0, %v75_v2 }
  0x47   :  { %1059 = vmatprep.mubr.msk.f32.mxu0 %vm83_vm0, %v44_v3  ;;  %1107 = vmatprep.mubr.msk.f32.mxu1 %vm83_vm0, %v76_v4 }
  0x4a   :  { %1060 = vmatmul.mubr.msk.f32.gmra.mrb[30].mxu0 %vm83_vm0, %v45_v5  ;;  %1108 = vmatmul.mubr.msk.f32.gmra.mrb[30].mxu1 %vm83_vm0, %v77_v6 }
  0xe1   :  { %v1016_v7 = vpop.f32.mrb[0].mxu0  ;;  %v1064_v9 = vpop.f32.mrb[0].mxu1 }
  0xe2   :  { %v666_v10 = vmul.f32 0.16666667, %v1016_v7  ;;  %v698_v11 = vmul.f32 0.16666667, %v1064_v9  ;;  %v346_v12 = vpop.f32.mrb[1].mxu0  ;;  %v506_v13 = vpop.f32.mrb[1].mxu1 }
  0xe3   :  { %v665_v14 = vmul.f32 0.16666667, %v346_v12  ;;  %v697_v15 = vmul.f32 0.16666667, %v506_v13 }
  0xe4   :  { %v737_v16 = vadd.f32 %v1418_v8, %v666_v10  ;;  %v769_v17 = vadd.f32 %v1418_v8, %v698_v11 }
  0xe5   :  { %v736_v18 = vadd.f32 %v1418_v8, %v665_v14  ;;  %v768_v19 = vadd.f32 %v1418_v8, %v697_v15  ;;  %v1019_v20 = vpop.f32.mrb[2].mxu0  ;;  %v1067_v21 = vpop.f32.mrb[2].mxu1 }
  0xe6   :  { %802 = vst.msk [vmem:[%s1743_s3 + $0x8] sm:$0xff] %vm800_vm2, %v737_v16  ;;  %834 = vst.msk [vmem:[%s1743_s3 + $0x108] sm:$0xff] %vm800_vm2, %v769_v17  ;;  %v668_v22 = vmul.f32 0.16666667, %v1019_v20  ;;  %v700_v23 = vmul.f32 0.16666667, %v1067_v21 }
  0xe7   :  { %v356_v24 = vpop.f32.mrb[3].mxu0  ;;  %v516_v25 = vpop.f32.mrb[3].mxu1  ;;  %801 = vst.msk [vmem:[%s1743_s3] sm:$0xff] %vm800_vm2, %v736_v18  ;;  %833 = vst.msk [vmem:[%s1743_s3 + $0x100] sm:$0xff] %vm800_vm2, %v768_v19 }
  0xe8   :  { %v667_v26 = vmul.f32 0.16666667, %v356_v24  ;;  %v699_v27 = vmul.f32 0.16666667, %v516_v25  ;;  %v739_v28 = vadd.f32 %v1418_v8, %v668_v22  ;;  %v771_v29 = vadd.f32 %v1418_v8, %v700_v23 }
  0xe9   :  { %v1022_v32 = vpop.f32.mrb[4].mxu0  ;;  %v1070_v33 = vpop.f32.mrb[4].mxu1 }
  0xea   :  { %v738_v30 = vadd.f32 %v1418_v8, %v667_v26  ;;  %v770_v31 = vadd.f32 %v1418_v8, %v699_v27  ;;  %804 = vst.msk [vmem:[%s1743_s3 + $0x18] sm:$0xff] %vm800_vm2, %v739_v28  ;;  %836 = vst.msk [vmem:[%s1743_s3 + $0x118] sm:$0xff] %vm800_vm2, %v771_v29  ;;  %v670_v34 = vmul.f32 0.16666667, %v1022_v32  ;;  %v702_v35 = vmul.f32 0.16666667, %v1070_v33 }
  0xeb   :  { %v366_v36 = vpop.f32.mrb[5].mxu0  ;;  %v526_v37 = vpop.f32.mrb[5].mxu1 }
  0xec   :  { %803 = vst.msk [vmem:[%s1743_s3 + $0x10] sm:$0xff] %vm800_vm2, %v738_v30  ;;  %835 = vst.msk [vmem:[%s1743_s3 + $0x110] sm:$0xff] %vm800_vm2, %v770_v31  ;;  %v669_v38 = vmul.f32 0.16666667, %v366_v36  ;;  %v701_v39 = vmul.f32 0.16666667, %v526_v37  ;;  %v741_v40 = vadd.f32 %v1418_v8, %v670_v34  ;;  %v773_v41 = vadd.f32 %v1418_v8, %v702_v35 }
  0xed   :  { %v1025_v44 = vpop.f32.mrb[6].mxu0  ;;  %v1073_v45 = vpop.f32.mrb[6].mxu1 }
  0xee   :  { %v740_v42 = vadd.f32 %v1418_v8, %v669_v38  ;;  %v772_v43 = vadd.f32 %v1418_v8, %v701_v39  ;;  %806 = vst.msk [vmem:[%s1743_s3 + $0x28] sm:$0xff] %vm800_vm2, %v741_v40  ;;  %838 = vst.msk [vmem:[%s1743_s3 + $0x128] sm:$0xff] %vm800_vm2, %v773_v41  ;;  %v672_v46 = vmul.f32 0.16666667, %v1025_v44  ;;  %v704_v47 = vmul.f32 0.16666667, %v1073_v45 }
  0xef   :  { %v376_v48 = vpop.f32.mrb[7].mxu0  ;;  %v536_v49 = vpop.f32.mrb[7].mxu1 }
  0xf0   :  { %805 = vst.msk [vmem:[%s1743_s3 + $0x20] sm:$0xff] %vm800_vm2, %v740_v42  ;;  %837 = vst.msk [vmem:[%s1743_s3 + $0x120] sm:$0xff] %vm800_vm2, %v772_v43  ;;  %v671_v50 = vmul.f32 0.16666667, %v376_v48  ;;  %v703_v51 = vmul.f32 0.16666667, %v536_v49  ;;  %v743_v52 = vadd.f32 %v1418_v8, %v672_v46  ;;  %v775_v53 = vadd.f32 %v1418_v8, %v704_v47 }
  0xf1   :  { %v1028_v56 = vpop.f32.mrb[8].mxu0  ;;  %v1076_v57 = vpop.f32.mrb[8].mxu1 }
  0xf2   :  { %v742_v54 = vadd.f32 %v1418_v8, %v671_v50  ;;  %v774_v55 = vadd.f32 %v1418_v8, %v703_v51  ;;  %808 = vst.msk [vmem:[%s1743_s3 + $0x38] sm:$0xff] %vm800_vm2, %v743_v52  ;;  %840 = vst.msk [vmem:[%s1743_s3 + $0x138] sm:$0xff] %vm800_vm2, %v775_v53  ;;  %v674_v58 = vmul.f32 0.16666667, %v1028_v56  ;;  %v706_v59 = vmul.f32 0.16666667, %v1076_v57 }
  0xf3   :  { %v386_v60 = vpop.f32.mrb[9].mxu0  ;;  %v546_v61 = vpop.f32.mrb[9].mxu1 }
  0xf4   :  { %807 = vst.msk [vmem:[%s1743_s3 + $0x30] sm:$0xff] %vm800_vm2, %v742_v54  ;;  %839 = vst.msk [vmem:[%s1743_s3 + $0x130] sm:$0xff] %vm800_vm2, %v774_v55  ;;  %v673_v62 = vmul.f32 0.16666667, %v386_v60  ;;  %v705_v63 = vmul.f32 0.16666667, %v546_v61  ;;  %v745_v0 = vadd.f32 %v1418_v8, %v674_v58  ;;  %v777_v1 = vadd.f32 %v1418_v8, %v706_v59 }
  0xf5   :  { %v1031_v4 = vpop.f32.mrb[10].mxu0  ;;  %v1079_v5 = vpop.f32.mrb[10].mxu1 }
  0xf6   :  { %v744_v2 = vadd.f32 %v1418_v8, %v673_v62  ;;  %v776_v3 = vadd.f32 %v1418_v8, %v705_v63  ;;  %810 = vst.msk [vmem:[%s1743_s3 + $0x48] sm:$0xff] %vm800_vm2, %v745_v0  ;;  %842 = vst.msk [vmem:[%s1743_s3 + $0x148] sm:$0xff] %vm800_vm2, %v777_v1  ;;  %v676_v6 = vmul.f32 0.16666667, %v1031_v4  ;;  %v708_v7 = vmul.f32 0.16666667, %v1079_v5 }
  0xf7   :  { %v396_v9 = vpop.f32.mrb[11].mxu0  ;;  %v556_v10 = vpop.f32.mrb[11].mxu1 }
  0xf8   :  { %809 = vst.msk [vmem:[%s1743_s3 + $0x40] sm:$0xff] %vm800_vm2, %v744_v2  ;;  %841 = vst.msk [vmem:[%s1743_s3 + $0x140] sm:$0xff] %vm800_vm2, %v776_v3  ;;  %v675_v11 = vmul.f32 0.16666667, %v396_v9  ;;  %v707_v12 = vmul.f32 0.16666667, %v556_v10  ;;  %v747_v13 = vadd.f32 %v1418_v8, %v676_v6  ;;  %v779_v14 = vadd.f32 %v1418_v8, %v708_v7 }
  0xf9   :  { %v1034_v17 = vpop.f32.mrb[12].mxu0  ;;  %v1082_v18 = vpop.f32.mrb[12].mxu1 }
  0xfa   :  { %v746_v15 = vadd.f32 %v1418_v8, %v675_v11  ;;  %v778_v16 = vadd.f32 %v1418_v8, %v707_v12  ;;  %812 = vst.msk [vmem:[%s1743_s3 + $0x58] sm:$0xff] %vm800_vm2, %v747_v13  ;;  %844 = vst.msk [vmem:[%s1743_s3 + $0x158] sm:$0xff] %vm800_vm2, %v779_v14  ;;  %v678_v19 = vmul.f32 0.16666667, %v1034_v17  ;;  %v710_v20 = vmul.f32 0.16666667, %v1082_v18 }
  0xfb   :  { %v406_v21 = vpop.f32.mrb[13].mxu0  ;;  %v566_v22 = vpop.f32.mrb[13].mxu1 }
  0xfc   :  { %811 = vst.msk [vmem:[%s1743_s3 + $0x50] sm:$0xff] %vm800_vm2, %v746_v15  ;;  %843 = vst.msk [vmem:[%s1743_s3 + $0x150] sm:$0xff] %vm800_vm2, %v778_v16  ;;  %v677_v23 = vmul.f32 0.16666667, %v406_v21  ;;  %v709_v24 = vmul.f32 0.16666667, %v566_v22  ;;  %v749_v25 = vadd.f32 %v1418_v8, %v678_v19  ;;  %v781_v26 = vadd.f32 %v1418_v8, %v710_v20 }
  0xfd   :  { %v1037_v29 = vpop.f32.mrb[14].mxu0  ;;  %v1085_v30 = vpop.f32.mrb[14].mxu1 }
  0xfe   :  { %v748_v27 = vadd.f32 %v1418_v8, %v677_v23  ;;  %v780_v28 = vadd.f32 %v1418_v8, %v709_v24  ;;  %814 = vst.msk [vmem:[%s1743_s3 + $0x68] sm:$0xff] %vm800_vm2, %v749_v25  ;;  %846 = vst.msk [vmem:[%s1743_s3 + $0x168] sm:$0xff] %vm800_vm2, %v781_v26  ;;  %v680_v31 = vmul.f32 0.16666667, %v1037_v29  ;;  %v712_v32 = vmul.f32 0.16666667, %v1085_v30 }
  0xff   :  { %v416_v33 = vpop.f32.mrb[15].mxu0  ;;  %v576_v34 = vpop.f32.mrb[15].mxu1 }
 0x100   :  { %813 = vst.msk [vmem:[%s1743_s3 + $0x60] sm:$0xff] %vm800_vm2, %v748_v27  ;;  %845 = vst.msk [vmem:[%s1743_s3 + $0x160] sm:$0xff] %vm800_vm2, %v780_v28  ;;  %v679_v35 = vmul.f32 0.16666667, %v416_v33  ;;  %v711_v36 = vmul.f32 0.16666667, %v576_v34  ;;  %v751_v37 = vadd.f32 %v1418_v8, %v680_v31  ;;  %v783_v38 = vadd.f32 %v1418_v8, %v712_v32 }
 0x101   :  { %v1040_v41 = vpop.f32.mrb[16].mxu0  ;;  %v1088_v42 = vpop.f32.mrb[16].mxu1 }
 0x102   :  { %v750_v39 = vadd.f32 %v1418_v8, %v679_v35  ;;  %v782_v40 = vadd.f32 %v1418_v8, %v711_v36  ;;  %816 = vst.msk [vmem:[%s1743_s3 + $0x78] sm:$0xff] %vm800_vm2, %v751_v37  ;;  %848 = vst.msk [vmem:[%s1743_s3 + $0x178] sm:$0xff] %vm800_vm2, %v783_v38  ;;  %v682_v43 = vmul.f32 0.16666667, %v1040_v41  ;;  %v714_v44 = vmul.f32 0.16666667, %v1088_v42 }
 0x103   :  { %v426_v45 = vpop.f32.mrb[17].mxu0  ;;  %v586_v46 = vpop.f32.mrb[17].mxu1 }
 0x104   :  { %815 = vst.msk [vmem:[%s1743_s3 + $0x70] sm:$0xff] %vm800_vm2, %v750_v39  ;;  %847 = vst.msk [vmem:[%s1743_s3 + $0x170] sm:$0xff] %vm800_vm2, %v782_v40  ;;  %v681_v47 = vmul.f32 0.16666667, %v426_v45  ;;  %v713_v48 = vmul.f32 0.16666667, %v586_v46  ;;  %v753_v49 = vadd.f32 %v1418_v8, %v682_v43  ;;  %v785_v50 = vadd.f32 %v1418_v8, %v714_v44 }
 0x105   :  { %v1043_v53 = vpop.f32.mrb[18].mxu0  ;;  %v1091_v54 = vpop.f32.mrb[18].mxu1 }
 0x106   :  { %v752_v51 = vadd.f32 %v1418_v8, %v681_v47  ;;  %v784_v52 = vadd.f32 %v1418_v8, %v713_v48  ;;  %818 = vst.msk [vmem:[%s1743_s3 + $0x88] sm:$0xff] %vm800_vm2, %v753_v49  ;;  %850 = vst.msk [vmem:[%s1743_s3 + $0x188] sm:$0xff] %vm800_vm2, %v785_v50  ;;  %v684_v55 = vmul.f32 0.16666667, %v1043_v53  ;;  %v716_v56 = vmul.f32 0.16666667, %v1091_v54 }
 0x107   :  { %v436_v57 = vpop.f32.mrb[19].mxu0  ;;  %v596_v58 = vpop.f32.mrb[19].mxu1 }
 0x108   :  { %817 = vst.msk [vmem:[%s1743_s3 + $0x80] sm:$0xff] %vm800_vm2, %v752_v51  ;;  %849 = vst.msk [vmem:[%s1743_s3 + $0x180] sm:$0xff] %vm800_vm2, %v784_v52  ;;  %v683_v59 = vmul.f32 0.16666667, %v436_v57  ;;  %v715_v60 = vmul.f32 0.16666667, %v596_v58  ;;  %v755_v61 = vadd.f32 %v1418_v8, %v684_v55  ;;  %v787_v62 = vadd.f32 %v1418_v8, %v716_v56 }
 0x109   :  { %v1046_v1 = vpop.f32.mrb[20].mxu0  ;;  %v1094_v2 = vpop.f32.mrb[20].mxu1 }
 0x10a   :  { %v754_v63 = vadd.f32 %v1418_v8, %v683_v59  ;;  %v786_v0 = vadd.f32 %v1418_v8, %v715_v60  ;;  %820 = vst.msk [vmem:[%s1743_s3 + $0x98] sm:$0xff] %vm800_vm2, %v755_v61  ;;  %852 = vst.msk [vmem:[%s1743_s3 + $0x198] sm:$0xff] %vm800_vm2, %v787_v62  ;;  %v686_v3 = vmul.f32 0.16666667, %v1046_v1  ;;  %v718_v4 = vmul.f32 0.16666667, %v1094_v2 }
 0x10b   :  { %v446_v5 = vpop.f32.mrb[21].mxu0  ;;  %v606_v6 = vpop.f32.mrb[21].mxu1 }
 0x10c   :  { %819 = vst.msk [vmem:[%s1743_s3 + $0x90] sm:$0xff] %vm800_vm2, %v754_v63  ;;  %851 = vst.msk [vmem:[%s1743_s3 + $0x190] sm:$0xff] %vm800_vm2, %v786_v0  ;;  %v685_v7 = vmul.f32 0.16666667, %v446_v5  ;;  %v717_v9 = vmul.f32 0.16666667, %v606_v6  ;;  %v757_v10 = vadd.f32 %v1418_v8, %v686_v3  ;;  %v789_v11 = vadd.f32 %v1418_v8, %v718_v4 }
 0x10d   :  { %v1049_v14 = vpop.f32.mrb[22].mxu0  ;;  %v1097_v15 = vpop.f32.mrb[22].mxu1 }
 0x10e   :  { %v756_v12 = vadd.f32 %v1418_v8, %v685_v7  ;;  %v788_v13 = vadd.f32 %v1418_v8, %v717_v9  ;;  %822 = vst.msk [vmem:[%s1743_s3 + $0xa8] sm:$0xff] %vm800_vm2, %v757_v10  ;;  %854 = vst.msk [vmem:[%s1743_s3 + $0x1a8] sm:$0xff] %vm800_vm2, %v789_v11  ;;  %v688_v16 = vmul.f32 0.16666667, %v1049_v14  ;;  %v720_v17 = vmul.f32 0.16666667, %v1097_v15 }
 0x10f   :  { %v456_v18 = vpop.f32.mrb[23].mxu0  ;;  %v616_v19 = vpop.f32.mrb[23].mxu1 }
 0x110   :  { %821 = vst.msk [vmem:[%s1743_s3 + $0xa0] sm:$0xff] %vm800_vm2, %v756_v12  ;;  %853 = vst.msk [vmem:[%s1743_s3 + $0x1a0] sm:$0xff] %vm800_vm2, %v788_v13  ;;  %v687_v20 = vmul.f32 0.16666667, %v456_v18  ;;  %v719_v21 = vmul.f32 0.16666667, %v616_v19  ;;  %v759_v22 = vadd.f32 %v1418_v8, %v688_v16  ;;  %v791_v23 = vadd.f32 %v1418_v8, %v720_v17 }
 0x111   :  { %v1052_v26 = vpop.f32.mrb[24].mxu0  ;;  %v1100_v27 = vpop.f32.mrb[24].mxu1 }
 0x112   :  { %v758_v24 = vadd.f32 %v1418_v8, %v687_v20  ;;  %v790_v25 = vadd.f32 %v1418_v8, %v719_v21  ;;  %824 = vst.msk [vmem:[%s1743_s3 + $0xb8] sm:$0xff] %vm800_vm2, %v759_v22  ;;  %856 = vst.msk [vmem:[%s1743_s3 + $0x1b8] sm:$0xff] %vm800_vm2, %v791_v23  ;;  %v690_v28 = vmul.f32 0.16666667, %v1052_v26  ;;  %v722_v29 = vmul.f32 0.16666667, %v1100_v27 }
 0x113   :  { %v466_v30 = vpop.f32.mrb[25].mxu0  ;;  %v626_v31 = vpop.f32.mrb[25].mxu1 }
 0x114   :  { %823 = vst.msk [vmem:[%s1743_s3 + $0xb0] sm:$0xff] %vm800_vm2, %v758_v24  ;;  %855 = vst.msk [vmem:[%s1743_s3 + $0x1b0] sm:$0xff] %vm800_vm2, %v790_v25  ;;  %v689_v32 = vmul.f32 0.16666667, %v466_v30  ;;  %v721_v33 = vmul.f32 0.16666667, %v626_v31  ;;  %v761_v34 = vadd.f32 %v1418_v8, %v690_v28  ;;  %v793_v35 = vadd.f32 %v1418_v8, %v722_v29 }
 0x115   :  { %v1055_v38 = vpop.f32.mrb[26].mxu0  ;;  %v1103_v39 = vpop.f32.mrb[26].mxu1 }
 0x116   :  { %v760_v36 = vadd.f32 %v1418_v8, %v689_v32  ;;  %v792_v37 = vadd.f32 %v1418_v8, %v721_v33  ;;  %826 = vst.msk [vmem:[%s1743_s3 + $0xc8] sm:$0xff] %vm800_vm2, %v761_v34  ;;  %858 = vst.msk [vmem:[%s1743_s3 + $0x1c8] sm:$0xff] %vm800_vm2, %v793_v35  ;;  %v692_v40 = vmul.f32 0.16666667, %v1055_v38  ;;  %v724_v41 = vmul.f32 0.16666667, %v1103_v39 }
 0x117   :  { %v476_v42 = vpop.f32.mrb[27].mxu0  ;;  %v636_v43 = vpop.f32.mrb[27].mxu1 }
 0x118   :  { %825 = vst.msk [vmem:[%s1743_s3 + $0xc0] sm:$0xff] %vm800_vm2, %v760_v36  ;;  %857 = vst.msk [vmem:[%s1743_s3 + $0x1c0] sm:$0xff] %vm800_vm2, %v792_v37  ;;  %v691_v44 = vmul.f32 0.16666667, %v476_v42  ;;  %v723_v45 = vmul.f32 0.16666667, %v636_v43  ;;  %v763_v46 = vadd.f32 %v1418_v8, %v692_v40  ;;  %v795_v47 = vadd.f32 %v1418_v8, %v724_v41 }
 0x119   :  { %v1058_v50 = vpop.f32.mrb[28].mxu0  ;;  %v1106_v51 = vpop.f32.mrb[28].mxu1 }
 0x11a   :  { %v762_v48 = vadd.f32 %v1418_v8, %v691_v44  ;;  %v794_v49 = vadd.f32 %v1418_v8, %v723_v45  ;;  %828 = vst.msk [vmem:[%s1743_s3 + $0xd8] sm:$0xff] %vm800_vm2, %v763_v46  ;;  %860 = vst.msk [vmem:[%s1743_s3 + $0x1d8] sm:$0xff] %vm800_vm2, %v795_v47  ;;  %v694_v52 = vmul.f32 0.16666667, %v1058_v50  ;;  %v726_v53 = vmul.f32 0.16666667, %v1106_v51 }
 0x11b   :  { %v486_v54 = vpop.f32.mrb[29].mxu0  ;;  %v646_v55 = vpop.f32.mrb[29].mxu1 }
 0x11c   :  { %827 = vst.msk [vmem:[%s1743_s3 + $0xd0] sm:$0xff] %vm800_vm2, %v762_v48  ;;  %859 = vst.msk [vmem:[%s1743_s3 + $0x1d0] sm:$0xff] %vm800_vm2, %v794_v49  ;;  %v693_v56 = vmul.f32 0.16666667, %v486_v54  ;;  %v725_v57 = vmul.f32 0.16666667, %v646_v55  ;;  %v765_v58 = vadd.f32 %v1418_v8, %v694_v52  ;;  %v797_v59 = vadd.f32 %v1418_v8, %v726_v53 }
 0x11d   :  { %v1061_v62 = vpop.f32.mrb[30].mxu0  ;;  %v1109_v63 = vpop.f32.mrb[30].mxu1 }
 0x11e   :  { %v764_v60 = vadd.f32 %v1418_v8, %v693_v56  ;;  %v796_v61 = vadd.f32 %v1418_v8, %v725_v57  ;;  %830 = vst.msk [vmem:[%s1743_s3 + $0xe8] sm:$0xff] %vm800_vm2, %v765_v58  ;;  %862 = vst.msk [vmem:[%s1743_s3 + $0x1e8] sm:$0xff] %vm800_vm2, %v797_v59  ;;  %v696_v0 = vmul.f32 0.16666667, %v1061_v62  ;;  %v728_v1 = vmul.f32 0.16666667, %v1109_v63 }
 0x11f   :  { %v496_v2 = vpop.f32.mrb[31].mxu0  ;;  %v656_v3 = vpop.f32.mrb[31].mxu1 }
 0x120   :  { %829 = vst.msk [vmem:[%s1743_s3 + $0xe0] sm:$0xff] %vm800_vm2, %v764_v60  ;;  %861 = vst.msk [vmem:[%s1743_s3 + $0x1e0] sm:$0xff] %vm800_vm2, %v796_v61  ;;  %v695_v4 = vmul.f32 0.16666667, %v496_v2  ;;  %v727_v5 = vmul.f32 0.16666667, %v656_v3  ;;  %v767_v6 = vadd.f32 %v1418_v8, %v696_v0  ;;  %v799_v7 = vadd.f32 %v1418_v8, %v728_v1 }
 0x122   :  { %v766_v9 = vadd.f32 %v1418_v8, %v695_v4  ;;  %v798_v10 = vadd.f32 %v1418_v8, %v727_v5  ;;  %832 = vst.msk [vmem:[%s1743_s3 + $0xf8] sm:$0xff] %vm800_vm2, %v767_v6  ;;  %864 = vst.msk [vmem:[%s1743_s3 + $0x1f8] sm:$0xff] %vm800_vm2, %v799_v7 }
 0x124   :  { %831 = vst.msk [vmem:[%s1743_s3 + $0xf0] sm:$0xff] %vm800_vm2, %v766_v9  ;;  %863 = vst.msk [vmem:[%s1743_s3 + $0x1f0] sm:$0xff] %vm800_vm2, %v798_v10 }

</bundles_post_ra>
